<compile_context>
chip_gen: v6e
topology: v6e:2x2x1
jax: 0.10.0
libtpu: 0.0.40
codegen_flags: <defaults>
</compile_context>

<pallas_src>
import math

import jax
import jax.numpy as jnp
from jax.experimental import pallas as pl
from jax.experimental.pallas import tpu as pltpu

DTYPE = jnp.float32


def make_positional_encoding_table(d_model, max_len=5000, dtype=DTYPE):
    """Same sinusoidal buffer as PositionalEncoding.__init__ (assumes even d_model)."""
    position = jnp.arange(max_len, dtype=dtype)[:, None]
    div_term = jnp.exp(jnp.arange(0, d_model, 2, dtype=dtype)
                       * (-math.log(10000.0) / d_model))
    pe = jnp.zeros((max_len, d_model), dtype)
    pe = pe.at[:, 0::2].set(jnp.sin(position * div_term))
    pe = pe.at[:, 1::2].set(jnp.cos(position * div_term))
    return pe


def _pe_add_kernel(x_ref, pe_ref, o_ref):
    # x_ref: (1, S, D) block for one batch element; pe_ref: (S, D), shared
    # across all grid steps. Dropout(p=0.1) is identity in eval mode, so the
    # forward is a single VPU add on VMEM-resident data.
    o_ref[...] = x_ref[...] + pe_ref[...][None, :, :]


def positional_encoding(x, pe):
    """x: (B, S, D); pe: (max_len, D). Returns x + pe[:S] (dropout = identity)."""
    B, S, D = x.shape
    pe_s = jax.lax.slice(pe, (0, 0), (S, D))  # static slice; no per-batch copy
    return pl.pallas_call(
        _pe_add_kernel,
        grid=(B,),
        in_specs=[
            pl.BlockSpec((1, S, D), lambda b: (b, 0, 0)),   # one batch row / step
            pl.BlockSpec((S, D), lambda b: (0, 0)),         # same pe block every step
        ],
        out_specs=pl.BlockSpec((1, S, D), lambda b: (b, 0, 0)),
        out_shape=jax.ShapeDtypeStruct((B, S, D), x.dtype),
        compiler_params=pltpu.CompilerParams(
            dimension_semantics=("parallel",)),             # v7x: shard batch over 2 TCs
    )(x, pe_s)


if __name__ == "__main__":
    B, S, D = 2, 8, 32        # batch, seq, d_model (matches the forecaster config)
    MAX_LEN = 5000            # module default

    key = jax.random.PRNGKey(0)
    x = jax.random.normal(key, (B, S, D), DTYPE)
    pe = make_positional_encoding_table(D, MAX_LEN)

    fwd = jax.jit(positional_encoding)
    out = jax.block_until_ready(fwd(x, pe))

    # reference: x + pe[:S] broadcast over batch (dropout = identity in eval)
    ref = x + pe[:S][None, :, :]
    assert out.shape == (B, S, D) and out.dtype == DTYPE
    assert jnp.allclose(out, ref, atol=1e-6, rtol=1e-6)

    print("KERNEL_OK")
</pallas_src>

<mosaic_0001>
module attributes {stable_mosaic.version = 11 : i64} {
  func.func @_pe_add_kernel(%arg0: i32, %arg1: memref<1x8x32xf32, #tpu.memory_space<vmem>>, %arg2: memref<8x32xf32, #tpu.memory_space<vmem>>, %arg3: memref<1x8x32xf32, #tpu.memory_space<vmem>>) attributes {dimension_semantics = [#tpu.dimension_semantics<parallel>], iteration_bounds = array<i64: 2>, scalar_prefetch = 0 : i64, scratch_operands = 0 : i64, tpu.core_type = #tpu.core_type<tc>, window_params = [{transform_indices = @transform_0, window_bounds = array<i64: 1, 8, 32>}, {pipeline_mode = #tpu.pipeline_mode<synchronous>, transform_indices = @transform_1, window_bounds = array<i64: 8, 32>}, {transform_indices = @transform_2, window_bounds = array<i64: 1, 8, 32>}]} {
    %c0 = arith.constant 0 : index
    %c0_0 = arith.constant 0 : index
    %c0_1 = arith.constant 0 : index
    %0 = vector.load %arg1[%c0, %c0_0, %c0_1] : memref<1x8x32xf32, #tpu.memory_space<vmem>>, vector<1x8x32xf32>
    %c0_2 = arith.constant 0 : index
    %c0_3 = arith.constant 0 : index
    %1 = vector.load %arg2[%c0_2, %c0_3] : memref<8x32xf32, #tpu.memory_space<vmem>>, vector<8x32xf32>
    %2 = vector.shape_cast %1 : vector<8x32xf32> to vector<1x8x32xf32>
    %3 = arith.addf %0, %2 : vector<1x8x32xf32>
    %c0_4 = arith.constant 0 : index
    %c0_5 = arith.constant 0 : index
    %c0_6 = arith.constant 0 : index
    %4 = vector.load %arg3[%c0_4, %c0_5, %c0_6] : memref<1x8x32xf32, #tpu.memory_space<vmem>>, vector<1x8x32xf32>
    tpu.vector_store %arg3[%c0_4, %c0_5, %c0_6], %3 {strides = array<i32>} : memref<1x8x32xf32, #tpu.memory_space<vmem>>, vector<1x8x32xf32>,
    return
  }
  func.func @transform_0(%arg0: i32) -> (i32, i32, i32) {
    %c0_i32 = arith.constant 0 : i32
    %c0_i32_0 = arith.constant 0 : i32
    %c0_i32_1 = arith.constant 0 : i32
    return %arg0, %c0_i32, %c0_i32_0 : i32, i32, i32
  }
  func.func @transform_1(%arg0: i32) -> (i32, i32) {
    %c0_i32 = arith.constant 0 : i32
    %c0_i32_0 = arith.constant 0 : i32
    %c0_i32_1 = arith.constant 0 : i32
    return %c0_i32, %c0_i32_0 : i32, i32
  }
  func.func @transform_2(%arg0: i32) -> (i32, i32, i32) {
    %c0_i32 = arith.constant 0 : i32
    %c0_i32_0 = arith.constant 0 : i32
    %c0_i32_1 = arith.constant 0 : i32
    return %arg0, %c0_i32, %c0_i32_0 : i32, i32, i32
  }
}

</mosaic_0001>

<bundles_post_ra>
// kernel: positional_encoding.1
= control target key start
LH: loop header
LB: loop body
LE: loop exit
PB: predicated region body
PF: predicated region fallthrough
CT: control target
= control target key end

     0   :  { %7 = vsyncpa [#allocation3], 0  ;;  %s434_s0 = inlined_call_operand.vmem [shape: f32[2,8,32], index: 0, kind: input, shape index: {}]   ;;  %s435_s1 = inlined_call_operand.vmem [shape: f32[8,32], index: 1, kind: input, shape index: {}]   ;;  %s436_s2 = inlined_call_operand.hbm [shape: f32[2,8,32], index: 2, kind: output, shape index: {}]  }
   0x1   :  { %9 = vsyncpa [#allocation3 + $0x1], 0  ;;  %s344_s9 = smov 0   ;;  %s346_s10 = smov 0  }
   0x2   :  { %s348_s11 = smov 0   ;;  %s350_s12 = smov 0  }
   0x3 LB: > { %s365_s13 = sadd.s32 4294967295, %s326_s12   ;;  %s217_s14 = sadd.s32 4294967294, %s326_s12   ;;  %s326_s12 = sphi %s350_s12, %s442_s12   ;;  %s322_s11 = sphi %s348_s11, %s441_s11   ;;  %s318_s10 = sphi %s346_s10, %s440_s10   ;;  %s314_s9 = sphi %s344_s9, %s439_s9  }
   0x4   : > { %s369_s15 = sadd.s32 1, %s326_s12   ;;  %s69_s16 = sadd.s32 1, %s322_s11 }
   0x5   : > { %s66_s17 = ssub.s32 %s326_s12, %s369_s15  ;;  %p79_p0 = scmp.ne.s32.totalorder %s322_s11, %s318_s10 }
   0x6   : > { %p67_p1 = scmp.eq.s32.totalorder %s66_s17, 0  ;;  %p80_p2 = scmp.eq.s32.totalorder %s365_s13, 1 }
   0x7   : > { %p85_p3 = scmp.ne.s32.totalorder %s318_s10, %s314_s9  ;;  %p86_p4 = scmp.eq.s32.totalorder %s217_s14, 1 }
   0x8   : > { %s380_s18 = scalar_select %p67_p1, %s322_s11, %s69_s16  }
   0x9   : > { %p382_p5 = por %p80_p2, %p79_p0  ;;  %p386_p6 = por %p86_p4, %p85_p3 }
   0xa   : > { %p220_p7 = scmp.ge.s32.totalorder %s326_s12, 1  ;;  %p114_p8 = scmp.lt.s32.totalorder %s326_s12, 3 }
   0xc   : > { %p115_p9 = pnand %p220_p7, %p114_p8 }
   0xd   : > { %s132_s21 = sand.u32 (!%p115_p9), 1, %s318_s10   ;;  %p135_p10 = scmp.lt.s32.totalorder (!%p115_p9), %s365_s13, 1 }
   0xe   : > { %118 = sbr.rel (%p115_p9) target bundleno = 41 (0x29), region = 28  ;;  %s221_s22 = sshll.u32 (!%p115_p9), %s132_s21, 3 }
   0xf   : > { %s224_s24 = sshll.u32 (!%p115_p9), %s365_s13, 7  ;;  %s134_s28 = scalar_lea.vmem (!%p115_p9), [#allocation2], %s221_s22 }
  0x10   : > { %s158_s29 = sshll.u32 (!%p115_p9), %s134_s28, 4  ;;  %s156_s7 = scalar_lea.hbm (!%p115_p9), %s436_s2, %s224_s24  ;;  %s159_s29 = int_to_ptr.vmem [resolvable:$true] %s158_s29 }
  0x11   : > { %s145_s8 = scalar_lea.sflag (!%p115_p9), [#allocation3], %s132_s21  ;;  %s328_s14 = smov (!%p115_p9), [#allocation2]  }
  0x12   : > { %s270_s16 = sshll.u32 (!%p115_p9), %s328_s14, 4  ;;  %s271_s16 = int_to_ptr.vmem [resolvable:$false] %s270_s16 }
  0x13   : > { %s136_s23 = scalar_select %p135_p10, %s365_s13, 1  ;;  %v140_v0 = vld [vmem:[%s435_s1] sm:$0xff]  ;;  %vm142_vm0 = vcmask 261120  }
  0x14   : > { %s266_s13 = scalar_lea.vmem %s159_s29, 128  ;;  %s272_s17 = scalar_lea.vmem %s271_s16, 256 }
  0x15   : > { %s222_s25 = sshll.u32 %s136_s23, 3  ;;  %p267_p11 = scmp.ne.s32.totalorder %s159_s29, %s266_s13 }
  0x16   : > { %s138_s4 = scalar_lea.vmem %s434_s0, %s222_s25  ;;  %p273_p0 = scmp.lt.s32.totalorder %s159_s29, %s271_s16 }
  0x17   : > { %v139_v1 = vld [vmem:[%s138_s4] sm:$0xff]  ;;  %p268_p12 = pnand %p267_p11, %p382_p5  ;;  %p274_p1 = scmp.lt.s32.totalorder %s272_s17, %s266_s13 }
  0x18   : > { %v141_v2 = vadd.f32 %v140_v0, %v139_v1 }
  0x19   : > { %p269_p13 = pneg %p268_p12  ;;  %p275_p2 = por %p274_p1, %p273_p0 }
  0x1a   : > { %143 = vst.msk [vmem:[%s134_s28] sm:$0xff] %vm142_vm0, %v141_v2 }
  0x1b   : > { %p276_p3 = pnand %p275_p2, %p269_p13 }
  0x1d   : > { %279 = shalt.err (!%p276_p3)
}
  0x1e   : > { %s280_s22 = scalar_lea.hbm %s156_s7, 128  ;;  %s284_s24 = scalar_lea.hbm %s436_s2, 256 }
  0x1f   : > { %p281_p4 = scmp.ne.s32.totalorder %s156_s7, %s280_s22  ;;  %p285_p9 = scmp.lt.s32.totalorder %s156_s7, %s436_s2 }
  0x20   : > { %p286_p10 = scmp.lt.s32.totalorder %s284_s24, %s280_s22 }
  0x21   : > { %p282_p7 = pnand %p281_p4, %p382_p5 }
  0x22   : > { %p287_p11 = por %p286_p10, %p285_p9 }
  0x23   : > { %p283_p8 = pneg %p282_p7 }
  0x25   : > { %p288_p12 = pnand %p287_p11, %p283_p8 }
  0x27   : > { %291 = shalt.err (!%p288_p12)
}
  0x28   : > { %227 = dma.vmem_to_hbm [thread:$0]  (%p382_p5), %s159_s29, 128, %s156_s7, %s145_s8  }
  0x29 PF: > { %p233_p13 = scmp.ge.s32.totalorder %s326_s12, 2  ;;  %s170_s27 = sand.u32 1, %s314_s9  }
  0x2a   : > { %s171_s28 = scalar_lea.sflag [#allocation3], %s170_s27 }
  0x2b   : > { %p230_p0 = pnand %p233_p13, %p386_p6 }
  0x2d   : > { %p231_p1 = pneg %p230_p0 }
  0x2f   : > { %309 = dma.done.wait (%p231_p1), %s171_s28, 128  }
  0x30   : > { %311 = vsyncadd (%p231_p1), %s171_s28, 4294967168  ;;  %p12_p2 = scmp.ge.s32.totalorder %s369_s15, 4   ;;  %s439_s9 = smov %s318_s10 }
  0x31   : > { %s440_s10 = smov %s322_s11  ;;  %s441_s11 = smov %s380_s18 }
  0x32   : > { %s442_s12 = smov %s369_s15  ;;  %14 = sbr.rel (!%p12_p2) target bundleno = 3 (0x3), region = 63 }
  0x37   :  { %176 = vsyncpa [#allocation3], 1 }
  0x38   :  { %178 = vsyncpa [#allocation3 + $0x1], 1 }

</bundles_post_ra>
